<compile_context>
chip_gen: v7x
topology: tpu7x:2x2x1
jax: 0.10.0
libtpu: 0.0.40
codegen_flags: <defaults>
</compile_context>

<pallas_src>
import functools

import jax
import jax.numpy as jnp
from jax import lax
from jax.experimental import pallas as pl
from jax.experimental.pallas import tpu as pltpu


def _head_kernel(x_ref, wqkv_ref, o_ref, *, head_size):
    # x_ref block:    (B_blk, T, C)
    # wqkv_ref block: (C, 3H)   -- pre-transposed, Q columns pre-scaled by H^-0.5
    # o_ref block:    (B_blk, T, H)
    x = x_ref[...]
    w = wqkv_ref[...]

    # Fused QKV projection: (B_blk, T, C) x (C, 3H) -> (B_blk, T, 3H)
    qkv = lax.dot_general(
        x, w, (((2,), (0,)), ((), ())), preferred_element_type=jnp.float32
    )
    H = head_size
    q = qkv[:, :, 0:H]          # scale already folded into the Q weight columns
    k = qkv[:, :, H:2 * H]
    v = qkv[:, :, 2 * H:3 * H]

    # scores = q @ k^T, contracting over H without materializing a transpose.
    scores = lax.dot_general(
        q, k, (((2,), (2,)), ((0,), (0,))), preferred_element_type=jnp.float32
    )  # (B_blk, T, T)

    # Causal mask (tril == 0 -> -inf). Diagonal is always unmasked, so no
    # all--inf rows and exp() below is safe.
    T = scores.shape[-1]
    row = lax.broadcasted_iota(jnp.int32, (T, T), 0)
    col = lax.broadcasted_iota(jnp.int32, (T, T), 1)
    scores = jnp.where((col <= row)[None, :, :], scores, -jnp.inf)

    # Numerically-stable softmax; reciprocal on the EUP.
    m = jnp.max(scores, axis=-1, keepdims=True)
    p = jnp.exp(scores - m)
    p = p * pl.reciprocal(jnp.sum(p, axis=-1, keepdims=True), approx=True)

    # Attention-weighted values: (B_blk, T, T) x (B_blk, T, H) -> (B_blk, T, H)
    out = lax.dot_general(
        p, v, (((2,), (1,)), ((0,), (0,))), preferred_element_type=jnp.float32
    )
    o_ref[...] = out.astype(o_ref.dtype)


def _choose_b_blk(B, T, C, H, vmem_budget_bytes=24 * 1024 * 1024):
    """Largest batch-block that (a) keeps the grid extent >= 2 when B >= 2
    (so both v7x TensorCores get work) and (b) fits a rough VMEM estimate."""
    itemsize = 4  # f32 accumulation / intermediates

    def fits(bb):
        io = 2 * (bb * T * C + bb * T * H) * itemsize + 2 * (C * 3 * H) * itemsize
        tmp = (bb * T * 3 * H + bb * T * T + bb * T * H) * itemsize
        return io + tmp <= vmem_budget_bytes

    divisors = [d for d in range(1, B + 1) if B % d == 0]
    cands = [d for d in divisors if (B // d) >= 2] or divisors
    for d in sorted(cands, reverse=True):
        if fits(d):
            return d
    return 1


@jax.jit
def head_forward(x, w_keys, w_queries, w_values):
    """Single-head causal attention, Pallas TPU kernel.

    x:         (B, T, C)  activations
    w_keys:    (H, C)     torch.nn.Linear weight layout
    w_queries: (H, C)
    w_values:  (H, C)
    returns    (B, T, H)
    """
    B, T, C = x.shape
    H = w_keys.shape[0]

    # Fuse + pre-transpose weights in the wrapper (layout plumbing, no kernel cost);
    # fold the 1/sqrt(H) attention scale into the query weight.
    scale = jnp.asarray(H, dtype=w_queries.dtype) ** -0.5
    w_qkv = jnp.concatenate([w_queries * scale, w_keys, w_values], axis=0).T  # (C, 3H)

    b_blk = _choose_b_blk(B, T, C, H)
    grid = (B // b_blk,)

    grid_spec = pltpu.PrefetchScalarGridSpec(
        num_scalar_prefetch=0,
        grid=grid,
        in_specs=[
            pl.BlockSpec((b_blk, T, C), lambda b: (b, 0, 0)),   # x batch-block
            pl.BlockSpec((C, 3 * H), lambda b: (0, 0)),         # fused QKV weight (resident)
        ],
        out_specs=pl.BlockSpec((b_blk, T, H), lambda b: (b, 0, 0)),
    )

    return pl.pallas_call(
        functools.partial(_head_kernel, head_size=H),
        out_shape=jax.ShapeDtypeStruct((B, T, H), x.dtype),
        grid_spec=grid_spec,
        compiler_params=pltpu.CompilerParams(
            dimension_semantics=("parallel",),
            vmem_limit_bytes=32 * 1024 * 1024,
        ),
    )(x, w_qkv)


def head_reference(x, w_keys, w_queries, w_values):
    """Pure-JAX reference mirroring the PyTorch forward."""
    k = x @ w_keys.T
    q = x @ w_queries.T
    v = x @ w_values.T
    scores = (q @ jnp.swapaxes(k, -2, -1)) * (k.shape[-1] ** -0.5)
    T = x.shape[1]
    tril = jnp.tril(jnp.ones((T, T), dtype=x.dtype))
    scores = jnp.where(tril == 0, -jnp.inf, scores)
    attn = jax.nn.softmax(scores, axis=-1)
    return attn @ v


if __name__ == "__main__":
    # Module hyperparams (small, consistent with the forward pass)
    batch = 2
    block_size = 8      # T (seq length == block_size so the full tril is used)
    n_embed = 32        # C
    head_size = 16      # H
    dr = 0.0            # dropout rate (identity in eval mode anyway)

    key = jax.random.PRNGKey(0)
    kx, kk, kq, kv = jax.random.split(key, 4)

    x = jax.random.normal(kx, (batch, block_size, n_embed), dtype=jnp.float32)

    # Deterministic parameter init (nn.Linear-like uniform(-1/sqrt(C), 1/sqrt(C)))
    bound = 1.0 / (n_embed ** 0.5)
    w_keys = jax.random.uniform(kk, (head_size, n_embed), jnp.float32, -bound, bound)
    w_queries = jax.random.uniform(kq, (head_size, n_embed), jnp.float32, -bound, bound)
    w_values = jax.random.uniform(kv, (head_size, n_embed), jnp.float32, -bound, bound)

    out = head_forward(x, w_keys, w_queries, w_values)
    out = jax.block_until_ready(out)

    ref = head_reference(x, w_keys, w_queries, w_values)
    assert out.shape == (batch, block_size, head_size)
    # Tolerance covers the EUP approximate reciprocal in the softmax denominator.
    assert jnp.allclose(out, ref, atol=2e-3, rtol=2e-3), "mismatch vs reference"

    print("KERNEL_OK")
</pallas_src>

<mosaic_0001>
module attributes {stable_mosaic.version = 11 : i64} {
  func.func @_head_kernel(%arg0: i32, %arg1: memref<1x8x32xf32, #tpu.memory_space<vmem>>, %arg2: memref<32x48xf32, #tpu.memory_space<vmem>>, %arg3: memref<1x8x16xf32, #tpu.memory_space<vmem>>) attributes {dimension_semantics = [#tpu.dimension_semantics<parallel>], iteration_bounds = array<i64: 2>, scalar_prefetch = 0 : i64, scratch_operands = 0 : i64, tpu.core_type = #tpu.core_type<tc>, window_params = [{transform_indices = @transform_0, window_bounds = array<i64: 1, 8, 32>}, {pipeline_mode = #tpu.pipeline_mode<synchronous>, transform_indices = @transform_1, window_bounds = array<i64: 32, 48>}, {transform_indices = @transform_2, window_bounds = array<i64: 1, 8, 16>}]} {
    %c0 = arith.constant 0 : index
    %c0_0 = arith.constant 0 : index
    %c0_1 = arith.constant 0 : index
    %0 = vector.load %arg1[%c0, %c0_0, %c0_1] : memref<1x8x32xf32, #tpu.memory_space<vmem>>, vector<1x8x32xf32>
    %c0_2 = arith.constant 0 : index
    %c0_3 = arith.constant 0 : index
    %1 = vector.load %arg2[%c0_2, %c0_3] : memref<32x48xf32, #tpu.memory_space<vmem>>, vector<32x48xf32>
    %cst = arith.constant dense<0.000000e+00> : vector<1x8x48xf32>
    %2 = tpu.matmul %0, %1, %cst {dimension_numbers = #tpu.dot_dimension_numbers<[2], [0], [0, 1], [1], [0, 0, 0, 1, 1, 1], [], []>} : vector<1x8x32xf32>, vector<32x48xf32>, vector<1x8x48xf32> -> vector<1x8x48xf32>
    %3 = vector.extract_strided_slice %2 {offsets = [0, 0, 0], sizes = [1, 8, 16], strides = [1, 1, 1]} : vector<1x8x48xf32> to vector<1x8x16xf32>
    %4 = vector.extract_strided_slice %2 {offsets = [0, 0, 16], sizes = [1, 8, 16], strides = [1, 1, 1]} : vector<1x8x48xf32> to vector<1x8x16xf32>
    %5 = vector.extract_strided_slice %2 {offsets = [0, 0, 32], sizes = [1, 8, 16], strides = [1, 1, 1]} : vector<1x8x48xf32> to vector<1x8x16xf32>
    %cst_4 = arith.constant dense<0.000000e+00> : vector<1x8x8xf32>
    %6 = tpu.matmul %3, %4, %cst_4 {dimension_numbers = #tpu.dot_dimension_numbers<[2], [2], [1], [1], [0, 0, 0, 1, 1, 1], [0], [0]>} : vector<1x8x16xf32>, vector<1x8x16xf32>, vector<1x8x8xf32> -> vector<1x8x8xf32>
    %7 = tpu.iota {dimensions = array<i32: 0>} : vector<8x8xi32>
    %8 = tpu.iota {dimensions = array<i32: 1>} : vector<8x8xi32>
    %9 = arith.cmpi sle, %8, %7 : vector<8x8xi32>
    %10 = vector.shape_cast %9 : vector<8x8xi1> to vector<1x8x8xi1>
    %cst_5 = arith.constant 0xFF800000 : f32
    %11 = vector.broadcast %cst_5 : f32 to vector<1x8x8xf32>
    %12 = arith.select %10, %6, %11 : vector<1x8x8xi1>, vector<1x8x8xf32>
    %cst_6 = arith.constant dense<0xFF800000> : vector<1x8xf32>
    %13 = vector.multi_reduction <maximumf>, %12, %cst_6 [2] : vector<1x8x8xf32> to vector<1x8xf32>
    %14 = vector.shape_cast %13 : vector<1x8xf32> to vector<1x8x1xf32>
    %15 = vector.broadcast %14 : vector<1x8x1xf32> to vector<1x8x8xf32>
    %16 = arith.subf %12, %15 : vector<1x8x8xf32>
    %17 = math.exp %16 : vector<1x8x8xf32>
    %cst_7 = arith.constant dense<0.000000e+00> : vector<1x8xf32>
    %18 = vector.multi_reduction <add>, %17, %cst_7 [2] : vector<1x8x8xf32> to vector<1x8xf32>
    %19 = vector.shape_cast %18 : vector<1x8xf32> to vector<1x8x1xf32>
    %20 = tpu.reciprocal %19 {approx = true} : vector<1x8x1xf32> -> vector<1x8x1xf32>
    %21 = vector.broadcast %20 : vector<1x8x1xf32> to vector<1x8x8xf32>
    %22 = arith.mulf %17, %21 : vector<1x8x8xf32>
    %cst_8 = arith.constant dense<0.000000e+00> : vector<1x8x16xf32>
    %23 = tpu.matmul %22, %5, %cst_8 {dimension_numbers = #tpu.dot_dimension_numbers<[2], [1], [1], [2], [0, 0, 0, 1, 1, 2], [0], [0]>} : vector<1x8x8xf32>, vector<1x8x16xf32>, vector<1x8x16xf32> -> vector<1x8x16xf32>
    %c0_9 = arith.constant 0 : index
    %c0_10 = arith.constant 0 : index
    %c0_11 = arith.constant 0 : index
    %24 = vector.load %arg3[%c0_9, %c0_10, %c0_11] : memref<1x8x16xf32, #tpu.memory_space<vmem>>, vector<1x8x16xf32>
    tpu.vector_store %arg3[%c0_9, %c0_10, %c0_11], %23 {strides = array<i32>} : memref<1x8x16xf32, #tpu.memory_space<vmem>>, vector<1x8x16xf32>,
    return
  }
  func.func @transform_0(%arg0: i32) -> (i32, i32, i32) {
    %c0_i32 = arith.constant 0 : i32
    %c0_i32_0 = arith.constant 0 : i32
    %c0_i32_1 = arith.constant 0 : i32
    return %arg0, %c0_i32, %c0_i32_0 : i32, i32, i32
  }
  func.func @transform_1(%arg0: i32) -> (i32, i32) {
    %c0_i32 = arith.constant 0 : i32
    %c0_i32_0 = arith.constant 0 : i32
    %c0_i32_1 = arith.constant 0 : i32
    return %c0_i32, %c0_i32_0 : i32, i32
  }
  func.func @transform_2(%arg0: i32) -> (i32, i32, i32) {
    %c0_i32 = arith.constant 0 : i32
    %c0_i32_0 = arith.constant 0 : i32
    %c0_i32_1 = arith.constant 0 : i32
    return %arg0, %c0_i32, %c0_i32_0 : i32, i32, i32
  }
}

</mosaic_0001>

<bundles_post_ra>
// kernel: head_forward.1
= control target key start
LH: loop header
LB: loop body
LE: loop exit
PB: predicated region body
PF: predicated region fallthrough
CT: control target
= control target key end

     0   :  { %7 = vsyncpa [#allocation3], 0  ;;  %s768_s0 = inlined_call_operand.vmem [shape: f32[2,8,32], index: 0, kind: input, shape index: {}]   ;;  %s769_s1 = inlined_call_operand.vmem [shape: f32[32,48], index: 1, kind: input, shape index: {}]   ;;  %s770_s2 = inlined_call_operand.hbm [shape: f32[2,8,16], index: 2, kind: output, shape index: {}]  }
   0x1   :  { %9 = vsyncpa [#allocation3 + $0x1], 0  ;;  %s647_s9 = smov 0   ;;  %s649_s10 = smov 0  }
   0x2   :  { %s651_s11 = smov 0   ;;  %s653_s12 = smov 0  }
   0x3 LB: > { %s668_s13 = sadd.s32 4294967295, %s624_s12   ;;  %s464_s14 = sadd.s32 4294967294, %s624_s12   ;;  %s624_s12 = sphi %s653_s12, %s776_s12   ;;  %s620_s11 = sphi %s651_s11, %s775_s11   ;;  %s616_s10 = sphi %s649_s10, %s774_s10   ;;  %s612_s9 = sphi %s647_s9, %s773_s9  }
   0x4   : > { %s672_s15 = sadd.s32 1, %s624_s12   ;;  %s69_s16 = sadd.s32 1, %s620_s11 }
   0x5   : > { %s66_s17 = ssub.s32 %s624_s12, %s672_s15  ;;  %p79_p0 = scmp.ne.s32.totalorder %s620_s11, %s616_s10 }
   0x6   : > { %p67_p1 = scmp.eq.s32.totalorder %s66_s17, 0  ;;  %p80_p2 = scmp.eq.s32.totalorder %s668_s13, 1 }
   0x7   : > { %p85_p3 = scmp.ne.s32.totalorder %s616_s10, %s612_s9  ;;  %p86_p4 = scmp.eq.s32.totalorder %s464_s14, 1 }
   0x8   : > { %s683_s18 = scalar_select %p67_p1, %s620_s11, %s69_s16  }
   0x9   : > { %p685_p5 = por %p80_p2, %p79_p0  ;;  %p689_p6 = por %p86_p4, %p85_p3 }
   0xa   : > { %p467_p7 = scmp.ge.s32.totalorder %s624_s12, 1  ;;  %p114_p8 = scmp.lt.s32.totalorder %s624_s12, 3 }
   0xc   : > { %p115_p9 = pnand %p467_p7, %p114_p8 }
   0xd   : > { %v140_v0 = vld [vmem:[%s769_s1] sm:$0xff] (!%p115_p9)  ;;  %v141_v1 = vld [vmem:[%s769_s1 + $0x8] sm:$0xff] (!%p115_p9)  ;;  %v142_v2 = vld [vmem:[%s769_s1 + $0x10] sm:$0xff] (!%p115_p9)  ;;  %v626_v3 = vmov (!%p115_p9), 0.0|0.0   ;;  %vm627_vm0 = vmmov (!%p115_p9), 0   ;;  %v628_v6 = vmov (!%p115_p9), 0.0   ;;  %v296_v12 = vlaneseq (!%p115_p9) }
   0xe   : > { %118 = sbr.rel (%p115_p9) target bundleno = 1109 (0x455), region = 28  ;;  %508 = vmatprep.subr.bf16.mxu0 (!%p115_p9), %v626_v3  ;;  %v509_v4 = vpack.c.bf16 (!%p115_p9), %v141_v1, %v140_v0  ;;  %v143_v5 = vld [vmem:[%s769_s1 + $0x18] sm:$0xff] (!%p115_p9)  ;;  %495 = vmatprep.mubr.msk.f32.mxu0 (!%p115_p9), %vm627_vm0, %v628_v6  ;;  %p135_p10 = scmp.lt.s32.totalorder (!%p115_p9), %s668_s13, 1  ;;  %vm144_vm1 = vcmask (!%p115_p9), 261120   ;;  %vm221_vm2 = vcmask (!%p115_p9), 130048   ;;  %vm302_vm4 = vcmask (!%p115_p9), 64512  }
   0xf   : > { %498 = vmatprep.subr.mxu1 (!%p115_p9), %v628_v6  ;;  %500 = vmatprep.mubr.msk.f32.mxu1 (!%p115_p9), %vm627_vm0, %v628_v6  ;;  %v512_v7 = vpack.c.bf16 (!%p115_p9), %v143_v5, %v142_v2  ;;  %s629_s6 = smov (!%p115_p9), 112   ;;  %v297_v13 = vshrl.u32 (!%p115_p9), %v296_v12, 7  ;;  %v299_v14 = vand.u32 (!%p115_p9), 127, %v296_v12  ;;  %s630_s7 = smov (!%p115_p9), 96  }
  0x10   : > { %510 = vmatpush3.bf16.msra.mxu0 (!%p115_p9), %v509_v4  ;;  %s132_s8 = sand.u32 (!%p115_p9), 1, %s616_s10   ;;  %s475_s16 = sshll.u32 (!%p115_p9), %s668_s13, 7 }
  0x11   : > { %511 = vmatprep.subr.bf16.mxu0 (!%p115_p9), %v626_v3  ;;  %vm300_vm3 = vcmp.le.s32.totalorder (!%p115_p9), %v299_v14, %v297_v13  ;;  %s468_s14 = sshll.u32 (!%p115_p9), %s132_s8, 3  ;;  %s725_s24 = scalar_lea.hbm (!%p115_p9), %s770_s2, %s475_s16 }
  0x12   : > { %s134_s17 = scalar_lea.vmem (!%p115_p9), [#allocation2], %s468_s14  ;;  %s392_s25 = scalar_lea.sflag (!%p115_p9), [#allocation3], %s132_s8 }
  0x13   : > { %s405_s21 = sshll.u32 (!%p115_p9), %s134_s17, 4  ;;  %s727_s21 = int_to_ptr.vmem [resolvable:$true] %s405_s21 }
  0x14   : > { %513 = vmatpush3.bf16.msra.mxu0 (!%p115_p9), %v512_v7  ;;  %s562_s26 = scalar_lea.vmem (!%p115_p9), %s727_s21, 128 }
  0x15   : > { %s136_s29 = scalar_select %p135_p10, %s668_s13, 1 }
  0x16   : > { %p563_p11 = scmp.ne.s32.totalorder %s727_s21, %s562_s26  ;;  %s631_s13 = smov [#allocation2]  }
  0x17   : > { %s469_s30 = sshll.u32 %s136_s29, 3  ;;  %s566_s27 = sshll.u32 %s631_s13, 4  ;;  %s567_s27 = int_to_ptr.vmem [resolvable:$false] %s566_s27 }
  0x18   : > { %s138_s5 = scalar_lea.vmem %s768_s0, %s469_s30  ;;  %p564_p12 = pnand %p563_p11, %p685_p5 }
  0x19   : > { %v139_v8 = vld [vmem:[%s138_s5] sm:$0xff]  ;;  %s568_s28 = scalar_lea.vmem %s567_s27, 256  ;;  %p569_p0 = scmp.lt.s32.totalorder %s727_s21, %s567_s27 }
  0x1a   : > { %496 = vmatmul.mubr.msk.f32.vlgmr.msra.gmra.mrb[0].mxu0 %vm144_vm1, %v139_v8  ;;  %p565_p13 = pneg %p564_p12  ;;  %p570_p1 = scmp.lt.s32.totalorder %s568_s28, %s562_s26 }
  0x1c   : > { %p571_p2 = por %p570_p1, %p569_p0 }
  0x1e   : > { %p572_p3 = pnand %p571_p2, %p565_p13 }
  0xed   : > { %v214_v9 = vpop.f32.mrb[0].mxu0 }
  0xee   : > { %219 = vrot.lane.b32.xlu0 %v214_v9, %s629_s6  ;;  %v497_v10 = vpop.f32.mrb[1].mxu0 }
 0x160   : > { %v220_v11 = vpop.permute.xlu0 %219 }
 0x161   : > { %499 = vmatpush3.xpose.msk.msra.mxu1 %vm221_vm2, %v220_v11 }
 0x162   : > { %503 = vmatprep.subr.mxu1 %v628_v6 }
 0x164   : > { %501 = vmatmul.mubr.msk.f32.vlgmr.msra.gmra.mrb[0].mxu1 %vm221_vm2, %v214_v9 }
 0x165   : > { %505 = vmatprep.mubr.msk.f32.mxu1 %vm627_vm0, %v628_v6 }
 0x237   : > { %v292_v15 = vpop.f32.mrb[0].mxu1 }
 0x238   : > { %v301_v16 = vsel %vm300_vm3, %v292_v15, -inf  ;;  %v502_v17 = vpop.f32.mrb[1].mxu1 }
 0x239   : > { %v303_v18 = vsel %vm302_vm4, %v301_v16, -inf }
 0x23a   : > { %304 = vmax.xlane.f32.xlu0 %v303_v18 }
 0x2c7   : > { %v305_v19 = vpop.xlane.xlu0 %304 }
 0x2c8   : > { %v306_v20 = vsub.f32 %v301_v16, %v305_v19 }
 0x2ca   : > { %v307_v21 = vmul.f32 1.442695, %v306_v20 }
 0x2cc   : > { %558 = vpow2.f32 %v307_v21 }
 0x2d6   : > { %v559_v22 = vpop.eup %558 }
 0x2d7   : > { %v309_v23 = vsel %vm302_vm4, %v559_v22, 0.0 }
 0x2d8   : > { %310 = vadd.xlane.f32.xlu1 %v309_v23 }
 0x2e9   : > { %314 = vrot.lane.b32.xlu1 %v214_v9, %s630_s7 }
 0x365   : > { %v311_v24 = vpop.xlane.xlu1 %310 }
 0x366   : > { %560 = vrcp.f32 %v311_v24 }
 0x369   : > { %v315_v25 = vpop.permute.xlu1 %314 }
 0x36a   : > { %504 = vmatpush3.msra.mxu1 %v315_v25 }
 0x370   : > { %v561_v26 = vpop.eup %560 }
 0x371   : > { %v313_v27 = vmul.f32 %v561_v26, %v559_v22 }
 0x373   : > { %506 = vmatmul.mubr.msk.f32.vlgmr.msra.gmra.mrb[2].mxu1 %vm302_vm4, %v313_v27 }
 0x446   : > { %v386_v28 = vpop.f32.mrb[2].mxu1 }
 0x447   : > { %390 = vst.msk [vmem:[%s134_s17] sm:$0xff] %vm221_vm2, %v386_v28  ;;  %v507_v29 = vpop.f32.mrb[3].mxu1 }
 0x448   : > { %575 = shalt.err (!%p572_p3)
}
 0x449   : > { %s576_s29 = scalar_lea.hbm %s725_s24, 128  ;;  %s580_s4 = scalar_lea.hbm %s770_s2, 256 }
 0x44a   : > { %p577_p4 = scmp.ne.s32.totalorder %s725_s24, %s576_s29  ;;  %p581_p9 = scmp.lt.u32.totalorder %s725_s24, %s770_s2 }
 0x44b   : > { %p582_p10 = scmp.lt.u32.totalorder %s580_s4, %s576_s29  ;;  %p584_p12 = scmp.lt.u32.totalorder %s576_s29, %s725_s24 }
 0x44c   : > { %p578_p7 = pnand %p577_p4, %p685_p5 }
 0x44d   : > { %p583_p11 = por %p582_p10, %p581_p9 }
 0x44e   : > { %p579_p8 = pneg %p578_p7 }
 0x44f   : > { %p585_p13 = por %p584_p12, %p583_p11 }
 0x451   : > { %p586_p0 = pnand %p585_p13, %p579_p8 }
 0x453   : > { %589 = shalt.err (!%p586_p0)
}
 0x454   : > { %514 = dma.vmem_to_hbm [thread:$0]  (%p685_p5), %s727_s21, 128, %s725_s24, %s392_s25  }
 0x455 PF: > { %p520_p1 = scmp.ge.s32.totalorder %s624_s12, 2  ;;  %s417_s7 = sand.u32 1, %s612_s9  }
 0x456   : > { %s418_s8 = scalar_lea.sflag [#allocation3], %s417_s7 }
 0x457   : > { %p517_p2 = pnand %p520_p1, %p689_p6 }
 0x459   : > { %607 = dma.done.wait (!%p517_p2), %s418_s8, 128  }
 0x45a   : > { %609 = vsyncadd (!%p517_p2), %s418_s8, 4294967168  ;;  %p12_p3 = scmp.ge.s32.totalorder %s672_s15, 4   ;;  %s773_s9 = smov %s616_s10 }
 0x45b   : > { %s774_s10 = smov %s620_s11  ;;  %s775_s11 = smov %s683_s18 }
 0x45c   : > { %s776_s12 = smov %s672_s15  ;;  %14 = sbr.rel (!%p12_p3) target bundleno = 3 (0x3), region = 63 }
 0x463   :  { %423 = vsyncpa [#allocation3], 1 }
 0x464   :  { %425 = vsyncpa [#allocation3 + $0x1], 1 }

</bundles_post_ra>
